<compile_context>
chip_gen: v6e
topology: v6e:2x2x1
jax: 0.10.0
libtpu: 0.0.40
codegen_flags: <defaults>
</compile_context>

<pallas_src>
import jax
import jax.numpy as jnp
from jax import lax
from jax.experimental import pallas as pl
from jax.experimental.pallas import tpu as pltpu


NEG_SLOPE = 0.2  # LeakyReLU negative slope from the module

# Contract the minor dim of both operands: (H, Din) x (TN, Din) -> (H, TN).
_NT_DIMS = (((1,), (1,)), ((), ()))


def discriminator_kernel(x_ref, w1t_ref, b1t_ref, w2t_ref, b2t_ref, o_ref):
    # ---- layer 1: h_t = W1^T @ x^T  (bf16 in, f32 accumulate on the MXU) ----
    h_t = lax.dot_general(
        w1t_ref[...], x_ref[...], _NT_DIMS, preferred_element_type=jnp.float32
    )                                               # (H, TN) f32
    h_t = h_t + b1t_ref[...]                        # (H, 1) broadcast over lanes

    # ---- LeakyReLU(0.2) in f32 (VPU) ----
    h_t = jnp.where(h_t >= 0.0, h_t, NEG_SLOPE * h_t)

    # ---- layer 2: y_t = W2^T @ h_t + b2  (f32 MXU), shape (Dout, TN) ----
    y_t = jnp.dot(w2t_ref[...], h_t, preferred_element_type=jnp.float32)
    y_t = y_t + b2t_ref[...]                        # (Dout, 1) broadcast

    # ---- sigmoid (EUP exp + divide), lane-dense full-width store ----
    o_ref[...] = 1.0 / (1.0 + jnp.exp(-y_t))        # (Dout, TN) f32


def reference_forward(x, w1, b1, w2, b2):
    """Pure-JAX f32 reference matching the PyTorch module exactly."""
    x = x.astype(jnp.float32)
    h = x @ w1 + b1
    h = jnp.where(h >= 0.0, h, NEG_SLOPE * h)
    y = h @ w2 + b2
    return jax.nn.sigmoid(y)


def _round_up(x, m):
    return ((x + m - 1) // m) * m


def discriminator_forward(x, w1, b1, w2, b2, *, tile_n=8192,
                          small_n_threshold=2048, force_pallas=False):
    """x: (N, Din). w1: (Din, H), b1: (H,), w2: (H, Dout), b2: (Dout,).

    Returns sigmoid(leaky_relu(x @ w1 + b1) @ w2 + b2), shape (N, Dout).
    """
    N, Din = x.shape
    H = w1.shape[1]
    Dout = w2.shape[1]

    # Small-N fast path: the XLA-fused 2-layer MLP beats a pallas_call launch
    # by a wide margin at these sizes.
    if N < small_n_threshold and not force_pallas:
        return reference_forward(x, w1, b1, w2, b2)

    # bf16 for the HBM-heavy operand (x) and the matching layer-1 weights;
    # everything downstream of the first matmul stays in f32.
    x_in = x.astype(jnp.bfloat16)                        # (N, Din)
    w1t = jnp.transpose(w1).astype(jnp.bfloat16)         # (H, Din)
    b1t = b1.reshape(H, 1).astype(jnp.float32)           # (H, 1)
    w2t = jnp.transpose(w2).astype(jnp.float32)          # (Dout, H)
    b2t = b2.reshape(Dout, 1).astype(jnp.float32)        # (Dout, 1)

    # Row-tile selection:
    #  * tiny N (forced path): one full-batch block (full-dim exception).
    #  * otherwise: as large as tile_n (multiple of 128), but capped so the
    #    grid has >= 2 tiles and the "parallel" batch axis can shard across
    #    TensorCores.
    if N <= 256:
        tn = N
    else:
        tn_cap = max(128, (tile_n // 128) * 128)
        tn_half = max(128, _round_up(pl.cdiv(N, 2), 128))
        tn = min(tn_cap, tn_half)
    grid = pl.cdiv(N, tn)  # ragged last block: Pallas masks the edge writeback

    out_t = pl.pallas_call(
        discriminator_kernel,
        out_shape=jax.ShapeDtypeStruct((Dout, N), jnp.float32),
        grid_spec=pltpu.PrefetchScalarGridSpec(
            num_scalar_prefetch=0,
            grid=(grid,),
            in_specs=[
                # x rows (streamed, bf16).  If profiling ever shows exposed
                # input DMA, add pipeline_mode=pl.Buffered(3) here.
                pl.BlockSpec((tn, Din), lambda i: (i, 0)),
                pl.BlockSpec((H, Din), lambda i: (0, 0)),     # W1^T (resident)
                pl.BlockSpec((H, 1), lambda i: (0, 0)),       # b1   (resident)
                pl.BlockSpec((Dout, H), lambda i: (0, 0)),    # W2^T (resident)
                pl.BlockSpec((Dout, 1), lambda i: (0, 0)),    # b2   (resident)
            ],
            out_specs=pl.BlockSpec((Dout, tn), lambda i: (0, i)),  # lane-dense
        ),
        compiler_params=pltpu.CompilerParams(
            dimension_semantics=("parallel",),
            vmem_limit_bytes=32 * 1024 * 1024,  # headroom; actual use ~1-2 MiB
        ),
    )(x_in, w1t, b1t, w2t, b2t)

    # (Dout, N) -> (N, Dout).  For Dout == 1 a reshape is a free bitcast;
    # avoid materializing a transpose copy.
    if Dout == 1:
        return out_t.reshape(N, 1)
    return jnp.transpose(out_t)


if __name__ == "__main__":
    # Shapes consistent with the module:
    # input_size = 32, hidden_size1 = 64, output_size = 1
    N, Din, H, Dout = 8, 32, 64, 1

    key = jax.random.PRNGKey(0)
    kx, k1, kb1, k2, kb2, kx2 = jax.random.split(key, 6)

    # weights ~ N(0, 0.1) (mirrors _initialize_weights), small uniform biases
    w1 = 0.1 * jax.random.normal(k1, (Din, H), dtype=jnp.float32)
    b1 = jax.random.uniform(kb1, (H,), jnp.float32, -0.1, 0.1)
    w2 = 0.1 * jax.random.normal(k2, (H, Dout), dtype=jnp.float32)
    b2 = jax.random.uniform(kb2, (Dout,), jnp.float32, -0.1, 0.1)

    # 1) tiny batch (module test shape) forced through the Pallas kernel.
    x_small = jax.random.normal(kx, (N, Din), dtype=jnp.float32)
    y_small = jax.block_until_ready(
        discriminator_forward(x_small, w1, b1, w2, b2, force_pallas=True))
    ref_small = reference_forward(x_small, w1, b1, w2, b2)
    assert y_small.shape == (N, Dout), y_small.shape
    assert jnp.allclose(y_small, ref_small, atol=1e-2, rtol=1e-2), (y_small, ref_small)

    # 2) multi-tile ragged batch through the Pallas kernel (grid > 1, masked
    #    edge block, parallel batch axis).
    N2 = 1000
    x_big = jax.random.normal(kx2, (N2, Din), dtype=jnp.float32)
    y_big = jax.block_until_ready(
        discriminator_forward(x_big, w1, b1, w2, b2, tile_n=256, force_pallas=True))
    ref_big = reference_forward(x_big, w1, b1, w2, b2)
    assert y_big.shape == (N2, Dout), y_big.shape
    assert jnp.allclose(y_big, ref_big, atol=1e-2, rtol=1e-2)

    # 3) default dispatch for small N takes the XLA-fused fast path.
    y_fast = jax.block_until_ready(discriminator_forward(x_small, w1, b1, w2, b2))
    assert y_fast.shape == (N, Dout)
    assert jnp.allclose(y_fast, ref_small, atol=1e-5, rtol=1e-5)

    print("KERNEL_OK")
</pallas_src>

<mosaic_0001>
module attributes {stable_mosaic.version = 11 : i64} {
  func.func @discriminator_kernel(%arg0: i32, %arg1: memref<8x32xbf16, #tpu.memory_space<vmem>>, %arg2: memref<64x32xbf16, #tpu.memory_space<vmem>>, %arg3: memref<64x1xf32, #tpu.memory_space<vmem>>, %arg4: memref<1x64xf32, #tpu.memory_space<vmem>>, %arg5: memref<1x1xf32, #tpu.memory_space<vmem>>, %arg6: memref<1x8xf32, #tpu.memory_space<vmem>>) attributes {dimension_semantics = [#tpu.dimension_semantics<parallel>], iteration_bounds = array<i64: 1>, scalar_prefetch = 0 : i64, scratch_operands = 0 : i64, tpu.core_type = #tpu.core_type<tc>, window_params = [{transform_indices = @transform_0, window_bounds = array<i64: 8, 32>}, {pipeline_mode = #tpu.pipeline_mode<synchronous>, transform_indices = @transform_1, window_bounds = array<i64: 64, 32>}, {pipeline_mode = #tpu.pipeline_mode<synchronous>, transform_indices = @transform_2, window_bounds = array<i64: 64, 1>}, {pipeline_mode = #tpu.pipeline_mode<synchronous>, transform_indices = @transform_3, window_bounds = array<i64: 1, 64>}, {pipeline_mode = #tpu.pipeline_mode<synchronous>, transform_indices = @transform_4, window_bounds = array<i64: 1, 1>}, {transform_indices = @transform_5, window_bounds = array<i64: 1, 8>}]} {
    %c0 = arith.constant 0 : index
    %c0_0 = arith.constant 0 : index
    %0 = vector.load %arg2[%c0, %c0_0] : memref<64x32xbf16, #tpu.memory_space<vmem>>, vector<64x32xbf16>
    %c0_1 = arith.constant 0 : index
    %c0_2 = arith.constant 0 : index
    %1 = vector.load %arg1[%c0_1, %c0_2] : memref<8x32xbf16, #tpu.memory_space<vmem>>, vector<8x32xbf16>
    %cst = arith.constant dense<0.000000e+00> : vector<64x8xf32>
    %2 = tpu.matmul %0, %1, %cst {dimension_numbers = #tpu.dot_dimension_numbers<[1], [1], [0], [0], [0, 0, 1, 0], [], []>} : vector<64x32xbf16>, vector<8x32xbf16>, vector<64x8xf32> -> vector<64x8xf32>
    %c0_3 = arith.constant 0 : index
    %c0_4 = arith.constant 0 : index
    %3 = vector.load %arg3[%c0_3, %c0_4] : memref<64x1xf32, #tpu.memory_space<vmem>>, vector<64x1xf32>
    %4 = vector.broadcast %3 : vector<64x1xf32> to vector<64x8xf32>
    %5 = arith.addf %2, %4 : vector<64x8xf32>
    %cst_5 = arith.constant 0.000000e+00 : f32
    %6 = vector.broadcast %cst_5 : f32 to vector<64x8xf32>
    %7 = arith.cmpf oge, %5, %6 : vector<64x8xf32>
    %cst_6 = arith.constant 2.000000e-01 : f32
    %8 = vector.broadcast %cst_6 : f32 to vector<64x8xf32>
    %9 = arith.mulf %8, %5 : vector<64x8xf32>
    %10 = arith.select %7, %5, %9 : vector<64x8xi1>, vector<64x8xf32>
    %c0_7 = arith.constant 0 : index
    %c0_8 = arith.constant 0 : index
    %11 = vector.load %arg4[%c0_7, %c0_8] : memref<1x64xf32, #tpu.memory_space<vmem>>, vector<1x64xf32>
    %cst_9 = arith.constant dense<0.000000e+00> : vector<1x8xf32>
    %12 = tpu.matmul %11, %10, %cst_9 {dimension_numbers = #tpu.dot_dimension_numbers<[1], [0], [0], [1], [0, 0, 1, 1], [], []>} : vector<1x64xf32>, vector<64x8xf32>, vector<1x8xf32> -> vector<1x8xf32>
    %c0_10 = arith.constant 0 : index
    %c0_11 = arith.constant 0 : index
    %13 = vector.load %arg5[%c0_10, %c0_11] : memref<1x1xf32, #tpu.memory_space<vmem>>, vector<1x1xf32>
    %14 = vector.broadcast %13 : vector<1x1xf32> to vector<1x8xf32>
    %15 = arith.addf %12, %14 : vector<1x8xf32>
    %cst_12 = arith.constant 0.000000e+00 : f32
    %16 = vector.broadcast %cst_12 : f32 to vector<1x8xf32>
    %17 = arith.subf %16, %15 : vector<1x8xf32>
    %18 = math.exp %17 : vector<1x8xf32>
    %cst_13 = arith.constant 1.000000e+00 : f32
    %19 = vector.broadcast %cst_13 : f32 to vector<1x8xf32>
    %20 = arith.addf %19, %18 : vector<1x8xf32>
    %cst_14 = arith.constant 1.000000e+00 : f32
    %21 = vector.broadcast %cst_14 : f32 to vector<1x8xf32>
    %22 = arith.divf %21, %20 : vector<1x8xf32>
    %c0_15 = arith.constant 0 : index
    %c0_16 = arith.constant 0 : index
    %23 = vector.load %arg6[%c0_15, %c0_16] : memref<1x8xf32, #tpu.memory_space<vmem>>, vector<1x8xf32>
    tpu.vector_store %arg6[%c0_15, %c0_16], %22 {strides = array<i32>} : memref<1x8xf32, #tpu.memory_space<vmem>>, vector<1x8xf32>,
    return
  }
  func.func @transform_0(%arg0: i32) -> (i32, i32) {
    %c0_i32 = arith.constant 0 : i32
    %c0_i32_0 = arith.constant 0 : i32
    return %arg0, %c0_i32 : i32, i32
  }
  func.func @transform_1(%arg0: i32) -> (i32, i32) {
    %c0_i32 = arith.constant 0 : i32
    %c0_i32_0 = arith.constant 0 : i32
    %c0_i32_1 = arith.constant 0 : i32
    return %c0_i32, %c0_i32_0 : i32, i32
  }
  func.func @transform_2(%arg0: i32) -> (i32, i32) {
    %c0_i32 = arith.constant 0 : i32
    %c0_i32_0 = arith.constant 0 : i32
    %c0_i32_1 = arith.constant 0 : i32
    return %c0_i32, %c0_i32_0 : i32, i32
  }
  func.func @transform_3(%arg0: i32) -> (i32, i32) {
    %c0_i32 = arith.constant 0 : i32
    %c0_i32_0 = arith.constant 0 : i32
    %c0_i32_1 = arith.constant 0 : i32
    return %c0_i32, %c0_i32_0 : i32, i32
  }
  func.func @transform_4(%arg0: i32) -> (i32, i32) {
    %c0_i32 = arith.constant 0 : i32
    %c0_i32_0 = arith.constant 0 : i32
    %c0_i32_1 = arith.constant 0 : i32
    return %c0_i32, %c0_i32_0 : i32, i32
  }
  func.func @transform_5(%arg0: i32) -> (i32, i32) {
    %c0_i32 = arith.constant 0 : i32
    %c0_i32_0 = arith.constant 0 : i32
    return %c0_i32, %arg0 : i32, i32
  }
}

</mosaic_0001>

<bundles_post_ra>
// kernel: tpu_custom_call.1
= control target key start
LH: loop header
LB: loop body
LE: loop exit
PB: predicated region body
PF: predicated region fallthrough
CT: control target
= control target key end

     0   :  { %s499_s0 = inlined_call_operand.vmem [shape: bf16[8,32], index: 0, kind: input, shape index: {}]   ;;  %s500_s1 = inlined_call_operand.vmem [shape: bf16[64,32], index: 1, kind: input, shape index: {}]   ;;  %s501_s2 = inlined_call_operand.vmem [shape: f32[64,1], index: 2, kind: input, shape index: {}]   ;;  %s502_s3 = inlined_call_operand.vmem [shape: f32[1,64], index: 3, kind: input, shape index: {}]   ;;  %s503_s4 = inlined_call_operand.<no memory space> [shape: f32[1,1], index: 4, kind: input, shape index: {}]   ;;  %s504_s5 = inlined_call_operand.hbm [shape: f32[1,8], index: 5, kind: output, shape index: {}]  }
   0x1   :  { %v10_v0 = vstv %s503_s4 }
   0x2   :  { %11 = vst [vmem:[#allocation2] sm:$0x1] %v10_v0 }
   0x3   :  { %v32_v1 = vld [vmem:[%s499_s0] sm:$0xf]  ;;  %vm101_vm0 = vcmask 261120   ;;  %v402_v4 = vmov 0   ;;  %v38_v5 = vld [vmem:[%s501_s2 + $0x28] sm:$0xff]  ;;  %v40_v6 = vld [vmem:[%s501_s2 + $0x38] sm:$0xff] }
   0x4   :  { %v372_v2 = vld [vmem:[%s500_s1] sm:$0xff]   ;;  %365 = vmatprep.subr.msk.bf16.mxu0 %vm101_vm0, %v32_v1  ;;  %v115_v3 = vsel %vm101_vm0, %v32_v1, 0  ;;  %371 = vset.pattern.permute.xlu1 %v402_v4  ;;  %v373_v7 = vld [vmem:[%s500_s1 + $0x8] sm:$0xff]   ;;  %v374_v8 = vld [vmem:[%s500_s1 + $0x10] sm:$0xff]  }
   0x5   :  { %337 = vmatpush3.bf16.xpose.msra.mxu0 %v115_v3  ;;  %338 = vmatprep.mubr.msk.bf16.mxu0 %vm101_vm0, %v372_v2  ;;  %v37_v9 = vld [vmem:[%s501_s2 + $0x20] sm:$0xff]  ;;  %v39_v10 = vld [vmem:[%s501_s2 + $0x30] sm:$0xff] }
   0x6   :  { %370 = vset.pattern.permute.xlu0 %v402_v4  ;;  %68 = vperm.xlu1 %371, %v38_v5  }
   0x7   :  { %78 = vperm.xlu0 %370, %v40_v6  }
   0x8   :  { %12 = vsyncpa [#allocation4], 0  ;;  %v35_v11 = vld [vmem:[%s501_s2 + $0x10] sm:$0xff]  ;;  %v36_v12 = vld [vmem:[%s501_s2 + $0x18] sm:$0xff]  ;;  %v403_v17 = vmov 0.0   ;;  %vm404_vm1 = vmmov 0   ;;  %v213_v59 = vlaneseq }
   0x9   :  { %v375_v13 = vld [vmem:[%s500_s1 + $0x18] sm:$0xff]   ;;  %v33_v14 = vld [vmem:[%s501_s2] sm:$0xff]  ;;  %v34_v15 = vld [vmem:[%s501_s2 + $0x8] sm:$0xff]  ;;  %346 = vmatprep.subr.mxu1 %v403_v17  ;;  %362 = vmatprep.mubr.msk.f32.mxu1 %vm404_vm1, %v403_v17  ;;  %vm217_vm10 = vcmask 523264   ;;  %vm297_vm11 = vcmask 57344  }
   0xa   :  { %63 = vperm.xlu1 %371, %v37_v9   ;;  %v207_v16 = vld [vmem:[#allocation2] sm:$0x1]  ;;  %v214_v60 = vshrl.u32 %v213_v59, 7 }
   0xb   :  { %73 = vperm.xlu0 %370, %v39_v10   ;;  %v206_v57 = vld [vmem:[%s502_s3] sm:$0x1]  ;;  %s405_s3 = smov [#allocation3]  }
   0xc   :  { %339 = vmatmul.mubr.msk.bf16.vlgmr.msra.gmra.mxu0 %vm101_vm0, %v373_v7  ;;  %v215_v61 = vsub.s32 0, %v214_v60  ;;  %s305_s19 = sshll.u32 %s405_s3, 4  ;;  %s306_s19 = int_to_ptr.vmem [resolvable:$true] %s305_s19 }
   0xd   :  { %342 = vmatprep.mubr.msk.bf16.mxu0 %vm101_vm0, %v374_v8  ;;  %s380_s20 = scalar_lea.vmem %s306_s19, 16  ;;  %s384_s21 = scalar_lea.vmem %s306_s19, 32 }
   0xe   :  { %53 = vperm.xlu1 %371, %v35_v11   ;;  %p381_p0 = scmp.ne.s32.totalorder %s306_s19, %s380_s20  ;;  %p385_p1 = scmp.lt.s32.totalorder %s306_s19, %s306_s19 }
   0xf   :  { %58 = vperm.xlu0 %370, %v36_v12   ;;  %p386_p2 = scmp.lt.s32.totalorder %s384_s21, %s380_s20 }
  0x11   :  { %p387_p3 = por %p386_p2, %p385_p1 }
  0x12   :  { %43 = vperm.xlu1 %371, %v33_v14  }
  0x13   :  { %48 = vperm.xlu0 %370, %v34_v15   ;;  %p388_p4 = pnand %p387_p3, %p381_p0 }
  0x14   :  { %343 = vmatmul.mubr.msk.bf16.gmra.mxu0 %vm101_vm0, %v375_v13 }
  0x17   :  { %210 = vperm.xlu0 %370, %v207_v16  }
  0x81   :  { %v69_v20 = vpop.permute.xlu1 %68 }
  0x82   :  { %v79_v18 = vpop.permute.xlu0 %78 }
  0x85   :  { %v64_v25 = vpop.permute.xlu1 %63 }
  0x86   :  { %v74_v23 = vpop.permute.xlu0 %73 }
  0x89   :  { %v54_v32 = vpop.permute.xlu1 %53 }
  0x8a   :  { %v59_v29 = vpop.permute.xlu0 %58 }
  0x8d   :  { %v44_v45 = vpop.permute.xlu1 %43 }
  0x8e   :  { %v49_v41 = vpop.permute.xlu0 %48 }
  0x92   :  { %v211_v62 = vpop.permute.xlu0 %210 }
  0x93   :  { %v216_v63 = vrot.slane %v211_v62, %v215_v61 }
  0xcc   :  { %v340_v19 = vpop.f32.mrf.mxu0 }
  0xcd   :  { %v160_v42 = vadd.f32 %v340_v19, %v54_v32 }
  0xce   :  { %v151_v21 = vpop.f32.mrf.mxu0 }
  0xcf   :  { %v192_v49 = vmul.f32 0.2, %v160_v42  ;;  %v152_v50 = vadd.f32 %v151_v21, %v44_v45  ;;  %vm184_vm7 = vcmp.ge.f32.partialorder %v160_v42, 0.0 }
  0xd0   :  { %v341_v22 = vpop.f32.mrf.mxu0 }
  0xd1   :  { %v163_v38 = vadd.f32 %v341_v22, %v59_v29  ;;  %v190_v54 = vmul.f32 0.2, %v152_v50  ;;  %v200_v55 = vsel %vm184_vm7, %v160_v42, %v192_v49  ;;  %vm182_vm9 = vcmp.ge.f32.partialorder %v152_v50, 0.0 }
  0xd2   :  { %v154_v24 = vpop.f32.mrf.mxu0 }
  0xd3   :  { %v193_v46 = vmul.f32 0.2, %v163_v38  ;;  %v155_v47 = vadd.f32 %v154_v24, %v49_v41  ;;  %vm185_vm6 = vcmp.ge.f32.partialorder %v163_v38, 0.0  ;;  %v198_v58 = vsel %vm182_vm9, %v152_v50, %v190_v54 }
  0xd4   :  { %v344_v26 = vpop.f32.mrf.mxu0 }
  0xd5   :  { %v176_v27 = vadd.f32 %v344_v26, %v74_v23  ;;  %v191_v52 = vmul.f32 0.2, %v155_v47  ;;  %v201_v53 = vsel %vm185_vm6, %v163_v38, %v193_v46  ;;  %vm183_vm8 = vcmp.ge.f32.partialorder %v155_v47, 0.0 }
  0xd6   :  { %v167_v28 = vpop.f32.mrf.mxu0 }
  0xd7   :  { %v196_v33 = vmul.f32 0.2, %v176_v27  ;;  %v168_v35 = vadd.f32 %v167_v28, %v64_v25  ;;  %vm188_vm3 = vcmp.ge.f32.partialorder %v176_v27, 0.0  ;;  %v199_v56 = vsel %vm183_vm8, %v155_v47, %v191_v52 }
  0xd8   :  { %v345_v30 = vpop.f32.mrf.mxu0 }
  0xd9   :  { %v179_v31 = vadd.f32 %v345_v30, %v79_v18  ;;  %v194_v43 = vmul.f32 0.2, %v168_v35  ;;  %v204_v44 = vsel %vm188_vm3, %v176_v27, %v196_v33  ;;  %vm186_vm5 = vcmp.ge.f32.partialorder %v168_v35, 0.0 }
  0xda   :  { %v170_v34 = vpop.f32.mrf.mxu0 }
  0xdb   :  { %v171_v36 = vadd.f32 %v170_v34, %v69_v20  ;;  %vm189_vm2 = vcmp.ge.f32.partialorder %v179_v31, 0.0  ;;  %v197_v37 = vmul.f32 0.2, %v179_v31  ;;  %v202_v51 = vsel %vm186_vm5, %v168_v35, %v194_v43 }
  0xdd   :  { %v195_v39 = vmul.f32 0.2, %v171_v36  ;;  %v205_v40 = vsel %vm189_vm2, %v179_v31, %v197_v37  ;;  %vm187_vm4 = vcmp.ge.f32.partialorder %v171_v36, 0.0 }
  0xde   :  { %347 = vmatpush3.msra.mxu1 %v205_v40 }
  0xdf   :  { %348 = vmatprep.subr.mxu1 %v403_v17  ;;  %v203_v48 = vsel %vm187_vm4, %v171_v36, %v195_v39 }
  0xe0   :  { %349 = vmatpush3.msra.mxu1 %v204_v44 }
  0xe1   :  { %350 = vmatprep.subr.mxu1 %v403_v17 }
  0xe2   :  { %351 = vmatpush3.msra.mxu1 %v203_v48 }
  0xe3   :  { %352 = vmatprep.subr.mxu1 %v403_v17 }
  0xe4   :  { %353 = vmatpush3.msra.mxu1 %v202_v51 }
  0xe5   :  { %354 = vmatprep.subr.mxu1 %v403_v17 }
  0xe6   :  { %355 = vmatpush3.msra.mxu1 %v201_v53 }
  0xe7   :  { %356 = vmatprep.subr.mxu1 %v403_v17 }
  0xe8   :  { %357 = vmatpush3.msra.mxu1 %v200_v55 }
  0xe9   :  { %358 = vmatprep.subr.mxu1 %v403_v17 }
  0xea   :  { %359 = vmatpush3.msra.mxu1 %v199_v56 }
  0xeb   :  { %360 = vmatprep.subr.mxu1 %v403_v17 }
  0xec   :  { %361 = vmatpush3.msra.mxu1 %v198_v58 }
  0xed   :  { %363 = vmatmul.mubr.msk.f32.vlgmr.msra.gmra.mxu1 %vm217_vm10, %v206_v57 }
 0x1ad   :  { %v287_v0 = vpop.f32.mrf.mxu1 }
 0x1ae   :  { %v288_v1 = vadd.f32 %v287_v0, %v216_v63 }
 0x1af   :  { %v364_v2 = vpop.f32.mrf.mxu1 }
 0x1b0   :  { %v291_v3 = vsub.f32 0.0, %v288_v1 }
 0x1b2   :  { %v292_v4 = vmul.f32 1.442695, %v291_v3 }
 0x1b4   :  { %376 = vpow2.f32 %v292_v4 }
 0x1c1   :  { %v377_v5 = vpop.eup %376 }
 0x1c2   :  { %v294_v6 = vadd.f32 1.0, %v377_v5 }
 0x1c4   :  { %378 = vrcp.f32 %v294_v6 }
 0x1d1   :  { %v379_v7 = vpop.eup %378 }
 0x1d2   :  { %298 = vst.msk [vmem:[#allocation3] sm:$0x1] %vm297_vm11, %v379_v7 }
 0x1d3   :  { %391 = shalt.err (!%p388_p4)
}
 0x1d4   :  { %308 = dma.vmem_to_hbm [thread:$0]  %s306_s19, 16, %s504_s5, [#allocation4]  }
 0x1d5   :  { %400 = dma.done.wait [#allocation4], 16  }
 0x1d6   :  { %401 = vsyncadd [#allocation4], 4294967280 }
 0x1d7   :  { %312 = vsyncpa [#allocation4], 1 }

</bundles_post_ra>
